<compile_context>
chip_gen: v6e
topology: v6e:2x2x1
jax: 0.10.0
libtpu: 0.0.40
codegen_flags: <defaults>
</compile_context>

<pallas_src>
import jax
import jax.numpy as jnp
from jax.experimental import pallas as pl
from jax.experimental.pallas import tpu as pltpu


def _round_up(x, m):
    return ((x + m - 1) // m) * m


def mlp_kernel(x_ref, w1_ref, b1_ref, w2_ref, b2_ref, w3_ref, b3_ref, o_ref):
    # Hidden layer 1: Linear + ReLU (MXU matmul, f32 accumulation, f32 bias/ReLU)
    h = jnp.dot(x_ref[...], w1_ref[...], preferred_element_type=jnp.float32)
    h = jnp.maximum(h + b1_ref[...], 0.0)
    # Hidden layer 2: Linear + ReLU (cast to weight dtype only at the MXU input)
    h = jnp.dot(h.astype(w2_ref.dtype), w2_ref[...],
                preferred_element_type=jnp.float32)
    h = jnp.maximum(h + b2_ref[...], 0.0)
    # Output layer: Linear (logits, no activation); output dim is lane-padded.
    logits = jnp.dot(h.astype(w3_ref.dtype), w3_ref[...],
                     preferred_element_type=jnp.float32) + b3_ref[...]
    o_ref[...] = logits.astype(o_ref.dtype)


def recommendation_model_forward(x, params, *, batch_tile=None, mxu_dtype=None):
    """x: [B, input_size] float32. params: dict of w1,b1,w2,b2,w3,b3.

    mxu_dtype: optional dtype (e.g. jnp.bfloat16) for the matmul *inputs*
    (x and the weights).  Accumulation, biases, ReLU stay float32.
    """
    B, in_dim = x.shape
    w1, b1 = params["w1"], params["b1"]
    w2, b2 = params["w2"], params["b2"]
    w3, b3 = params["w3"], params["b3"]
    h1, h2, out_dim = w1.shape[1], w2.shape[1], w3.shape[1]

    # ---- lane-dense output: pad the final output dim up to 128 lanes ----
    out_pad = _round_up(out_dim, 128)
    if out_pad != out_dim:
        w3 = jnp.pad(w3, ((0, 0), (0, out_pad - out_dim)))
        b3 = jnp.pad(b3, ((0, 0), (0, out_pad - out_dim)))

    # ---- optional bf16 MXU inputs (v6e/v7x): halves weight DMA bytes ----
    if mxu_dtype is not None:
        x = x.astype(mxu_dtype)
        w1 = w1.astype(mxu_dtype)
        w2 = w2.astype(mxu_dtype)
        w3 = w3.astype(mxu_dtype)
    # biases stay float32 (v5e VPU has no bf16; accumulation is f32 anyway)

    # ---- batch tiling: large M tile feeds the MXU and amortizes the
    # ~0.35us/step pipeline overhead; keep >=2 parallel grid steps when the
    # batch allows so v7x's two TensorCores both get work. ----
    if batch_tile is None:
        if B >= 1024:
            batch_tile = 512
        elif B >= 256:
            batch_tile = _round_up(B // 2, 8)   # 2+ parallel steps
        else:
            batch_tile = _round_up(B, 8)        # tiny batch: single step
    batch_tile = max(8, _round_up(batch_tile, 8))

    B_pad = _round_up(B, batch_tile)
    if B_pad != B:
        x = jnp.pad(x, ((0, B_pad - B), (0, 0)))
    grid = (B_pad // batch_tile,)

    out = pl.pallas_call(
        mlp_kernel,
        out_shape=jax.ShapeDtypeStruct((B_pad, out_pad), jnp.float32),
        grid=grid,
        in_specs=[
            # activations: tile over batch
            pl.BlockSpec((batch_tile, in_dim), lambda i: (i, 0)),
            # weights / biases: full arrays, same block every step
            pl.BlockSpec((in_dim, h1), lambda i: (0, 0)),
            pl.BlockSpec((1, h1), lambda i: (0, 0)),
            pl.BlockSpec((h1, h2), lambda i: (0, 0)),
            pl.BlockSpec((1, h2), lambda i: (0, 0)),
            pl.BlockSpec((h2, out_pad), lambda i: (0, 0)),
            pl.BlockSpec((1, out_pad), lambda i: (0, 0)),
        ],
        out_specs=pl.BlockSpec((batch_tile, out_pad), lambda i: (i, 0)),
        compiler_params=pltpu.CompilerParams(
            dimension_semantics=("parallel",),
        ),
    )(x, w1, b1, w2, b2, w3, b3)

    # undo batch padding and lane padding (pure slicing, no compute)
    return out[:B, :out_dim]


def init_params(key, input_size, hidden_layers, output_size):
    """Deterministic init mimicking PyTorch Linear default (uniform +/-1/sqrt(fan_in))."""
    dims = [input_size] + list(hidden_layers) + [output_size]
    params = {}
    for idx, (d_in, d_out) in enumerate(zip(dims[:-1], dims[1:]), start=1):
        key, kw, kb = jax.random.split(key, 3)
        bound = 1.0 / jnp.sqrt(jnp.float32(d_in))
        params[f"w{idx}"] = jax.random.uniform(
            kw, (d_in, d_out), jnp.float32, -bound, bound
        )
        params[f"b{idx}"] = jax.random.uniform(
            kb, (1, d_out), jnp.float32, -bound, bound
        )
    return params


def reference_forward(x, params):
    """Plain-JAX reference of the same MLP (for correctness check)."""
    h = jnp.maximum(x @ params["w1"] + params["b1"], 0.0)
    h = jnp.maximum(h @ params["w2"] + params["b2"], 0.0)
    return h @ params["w3"] + params["b3"]


if __name__ == "__main__":
    # ModelDimensions(input_size=32, hidden_layers=(64, 32), output_size=8)
    input_size = 32
    hidden_layers = (64, 32)
    output_size = 8
    batch = 256  # big enough batch for 2 parallel grid steps (v7x megacore)

    key = jax.random.PRNGKey(0)
    key, kx = jax.random.split(key)
    x = jax.random.normal(kx, (batch, input_size), jnp.float32)
    params = init_params(key, input_size, hidden_layers, output_size)

    ref = reference_forward(x, params)

    # float32 MXU path (bit-for-bit comparable to the f32 reference)
    logits = jax.block_until_ready(recommendation_model_forward(x, params))
    assert logits.shape == (batch, output_size)
    assert jnp.allclose(logits, ref, atol=1e-5, rtol=1e-5), "f32 mismatch vs reference"

    # bf16-MXU-input path (v6e/v7x lever; accumulation/bias/ReLU stay f32)
    logits_bf16 = jax.block_until_ready(
        recommendation_model_forward(x, params, mxu_dtype=jnp.bfloat16)
    )
    assert logits_bf16.shape == (batch, output_size)
    assert jnp.allclose(logits_bf16, ref, atol=1e-1, rtol=5e-2), "bf16 mismatch vs reference"

    print("KERNEL_OK")
</pallas_src>

<mosaic_0001>
module attributes {stable_mosaic.version = 11 : i64} {
  func.func @mlp_kernel(%arg0: i32, %arg1: memref<128x32xf32, #tpu.memory_space<vmem>>, %arg2: memref<32x64xf32, #tpu.memory_space<vmem>>, %arg3: memref<1x64xf32, #tpu.memory_space<vmem>>, %arg4: memref<64x32xf32, #tpu.memory_space<vmem>>, %arg5: memref<1x32xf32, #tpu.memory_space<vmem>>, %arg6: memref<32x128xf32, #tpu.memory_space<vmem>>, %arg7: memref<1x128xf32, #tpu.memory_space<vmem>>, %arg8: memref<128x128xf32, #tpu.memory_space<vmem>>) attributes {dimension_semantics = [#tpu.dimension_semantics<parallel>], iteration_bounds = array<i64: 2>, scalar_prefetch = 0 : i64, scratch_operands = 0 : i64, tpu.core_type = #tpu.core_type<tc>, window_params = [{transform_indices = @transform_0, window_bounds = array<i64: 128, 32>}, {pipeline_mode = #tpu.pipeline_mode<synchronous>, transform_indices = @transform_1, window_bounds = array<i64: 32, 64>}, {pipeline_mode = #tpu.pipeline_mode<synchronous>, transform_indices = @transform_2, window_bounds = array<i64: 1, 64>}, {pipeline_mode = #tpu.pipeline_mode<synchronous>, transform_indices = @transform_3, window_bounds = array<i64: 64, 32>}, {pipeline_mode = #tpu.pipeline_mode<synchronous>, transform_indices = @transform_4, window_bounds = array<i64: 1, 32>}, {pipeline_mode = #tpu.pipeline_mode<synchronous>, transform_indices = @transform_5, window_bounds = array<i64: 32, 128>}, {pipeline_mode = #tpu.pipeline_mode<synchronous>, transform_indices = @transform_6, window_bounds = array<i64: 1, 128>}, {transform_indices = @transform_7, window_bounds = array<i64: 128, 128>}]} {
    %c0 = arith.constant 0 : index
    %c0_0 = arith.constant 0 : index
    %0 = vector.load %arg1[%c0, %c0_0] : memref<128x32xf32, #tpu.memory_space<vmem>>, vector<128x32xf32>
    %c0_1 = arith.constant 0 : index
    %c0_2 = arith.constant 0 : index
    %1 = vector.load %arg2[%c0_1, %c0_2] : memref<32x64xf32, #tpu.memory_space<vmem>>, vector<32x64xf32>
    %cst = arith.constant dense<0.000000e+00> : vector<128x64xf32>
    %2 = tpu.matmul %0, %1, %cst {dimension_numbers = #tpu.dot_dimension_numbers<[1], [0], [0], [1], [0, 0, 1, 1], [], []>} : vector<128x32xf32>, vector<32x64xf32>, vector<128x64xf32> -> vector<128x64xf32>
    %c0_3 = arith.constant 0 : index
    %c0_4 = arith.constant 0 : index
    %3 = vector.load %arg3[%c0_3, %c0_4] : memref<1x64xf32, #tpu.memory_space<vmem>>, vector<1x64xf32>
    %4 = vector.broadcast %3 : vector<1x64xf32> to vector<128x64xf32>
    %5 = arith.addf %2, %4 : vector<128x64xf32>
    %cst_5 = arith.constant 0.000000e+00 : f32
    %6 = vector.broadcast %cst_5 : f32 to vector<128x64xf32>
    %7 = arith.maximumf %5, %6 : vector<128x64xf32>
    %c0_6 = arith.constant 0 : index
    %c0_7 = arith.constant 0 : index
    %8 = vector.load %arg4[%c0_6, %c0_7] : memref<64x32xf32, #tpu.memory_space<vmem>>, vector<64x32xf32>
    %cst_8 = arith.constant dense<0.000000e+00> : vector<128x32xf32>
    %9 = tpu.matmul %7, %8, %cst_8 {dimension_numbers = #tpu.dot_dimension_numbers<[1], [0], [0], [1], [0, 0, 1, 1], [], []>} : vector<128x64xf32>, vector<64x32xf32>, vector<128x32xf32> -> vector<128x32xf32>
    %c0_9 = arith.constant 0 : index
    %c0_10 = arith.constant 0 : index
    %10 = vector.load %arg5[%c0_9, %c0_10] : memref<1x32xf32, #tpu.memory_space<vmem>>, vector<1x32xf32>
    %11 = vector.broadcast %10 : vector<1x32xf32> to vector<128x32xf32>
    %12 = arith.addf %9, %11 : vector<128x32xf32>
    %cst_11 = arith.constant 0.000000e+00 : f32
    %13 = vector.broadcast %cst_11 : f32 to vector<128x32xf32>
    %14 = arith.maximumf %12, %13 : vector<128x32xf32>
    %c0_12 = arith.constant 0 : index
    %c0_13 = arith.constant 0 : index
    %15 = vector.load %arg6[%c0_12, %c0_13] : memref<32x128xf32, #tpu.memory_space<vmem>>, vector<32x128xf32>
    %cst_14 = arith.constant dense<0.000000e+00> : vector<128x128xf32>
    %16 = tpu.matmul %14, %15, %cst_14 {dimension_numbers = #tpu.dot_dimension_numbers<[1], [0], [0], [1], [0, 0, 1, 1], [], []>} : vector<128x32xf32>, vector<32x128xf32>, vector<128x128xf32> -> vector<128x128xf32>
    %c0_15 = arith.constant 0 : index
    %c0_16 = arith.constant 0 : index
    %17 = vector.load %arg7[%c0_15, %c0_16] : memref<1x128xf32, #tpu.memory_space<vmem>>, vector<1x128xf32>
    %18 = vector.broadcast %17 : vector<1x128xf32> to vector<128x128xf32>
    %19 = arith.addf %16, %18 : vector<128x128xf32>
    %c0_17 = arith.constant 0 : index
    %c0_18 = arith.constant 0 : index
    %20 = vector.load %arg8[%c0_17, %c0_18] : memref<128x128xf32, #tpu.memory_space<vmem>>, vector<128x128xf32>
    tpu.vector_store %arg8[%c0_17, %c0_18], %19 {strides = array<i32>} : memref<128x128xf32, #tpu.memory_space<vmem>>, vector<128x128xf32>,
    return
  }
  func.func @transform_0(%arg0: i32) -> (i32, i32) {
    %c0_i32 = arith.constant 0 : i32
    %c0_i32_0 = arith.constant 0 : i32
    return %arg0, %c0_i32 : i32, i32
  }
  func.func @transform_1(%arg0: i32) -> (i32, i32) {
    %c0_i32 = arith.constant 0 : i32
    %c0_i32_0 = arith.constant 0 : i32
    %c0_i32_1 = arith.constant 0 : i32
    return %c0_i32, %c0_i32_0 : i32, i32
  }
  func.func @transform_2(%arg0: i32) -> (i32, i32) {
    %c0_i32 = arith.constant 0 : i32
    %c0_i32_0 = arith.constant 0 : i32
    %c0_i32_1 = arith.constant 0 : i32
    return %c0_i32, %c0_i32_0 : i32, i32
  }
  func.func @transform_3(%arg0: i32) -> (i32, i32) {
    %c0_i32 = arith.constant 0 : i32
    %c0_i32_0 = arith.constant 0 : i32
    %c0_i32_1 = arith.constant 0 : i32
    return %c0_i32, %c0_i32_0 : i32, i32
  }
  func.func @transform_4(%arg0: i32) -> (i32, i32) {
    %c0_i32 = arith.constant 0 : i32
    %c0_i32_0 = arith.constant 0 : i32
    %c0_i32_1 = arith.constant 0 : i32
    return %c0_i32, %c0_i32_0 : i32, i32
  }
  func.func @transform_5(%arg0: i32) -> (i32, i32) {
    %c0_i32 = arith.constant 0 : i32
    %c0_i32_0 = arith.constant 0 : i32
    %c0_i32_1 = arith.constant 0 : i32
    return %c0_i32, %c0_i32_0 : i32, i32
  }
  func.func @transform_6(%arg0: i32) -> (i32, i32) {
    %c0_i32 = arith.constant 0 : i32
    %c0_i32_0 = arith.constant 0 : i32
    %c0_i32_1 = arith.constant 0 : i32
    return %c0_i32, %c0_i32_0 : i32, i32
  }
  func.func @transform_7(%arg0: i32) -> (i32, i32) {
    %c0_i32 = arith.constant 0 : i32
    %c0_i32_0 = arith.constant 0 : i32
    return %arg0, %c0_i32 : i32, i32
  }
}

</mosaic_0001>

<bundles_post_ra>
// kernel: tpu_custom_call.1
= control target key start
LH: loop header
LB: loop body
LE: loop exit
PB: predicated region body
PF: predicated region fallthrough
CT: control target
= control target key end

     0   :  { %12 = vsyncpa [#allocation3], 0  ;;  %s1671_s0 = inlined_call_operand.vmem [shape: f32[256,32], index: 0, kind: input, shape index: {}]   ;;  %s1672_s1 = inlined_call_operand.vmem [shape: f32[32,64], index: 1, kind: input, shape index: {}]   ;;  %s1673_s2 = inlined_call_operand.vmem [shape: f32[1,64], index: 2, kind: input, shape index: {}]   ;;  %s1674_s3 = inlined_call_operand.vmem [shape: f32[64,32], index: 3, kind: input, shape index: {}]   ;;  %s1675_s4 = inlined_call_operand.vmem [shape: f32[1,32], index: 4, kind: input, shape index: {}]   ;;  %s1676_s5 = inlined_call_operand.vmem [shape: f32[32,128], index: 5, kind: input, shape index: {}]   ;;  %s1677_s6 = inlined_call_operand.vmem [shape: f32[1,128], index: 6, kind: input, shape index: {}]   ;;  %s1678_s7 = inlined_call_operand.hbm [shape: f32[256,128], index: 7, kind: output, shape index: {}]  }
   0x1   :  { %14 = vsyncpa [#allocation3 + $0x1], 0  ;;  %s1424_s24 = smov 0   ;;  %s1426_s25 = smov 0  }
   0x2   :  { %s1428_s26 = smov 0   ;;  %s1430_s27 = smov 0  }
   0x3 LB: > { %s1445_s28 = sadd.s32 4294967295, %s1379_s27   ;;  %s1038_s29 = sadd.s32 4294967294, %s1379_s27   ;;  %s1379_s27 = sphi %s1430_s27, %s1684_s27   ;;  %s1375_s26 = sphi %s1428_s26, %s1683_s26   ;;  %s1371_s25 = sphi %s1426_s25, %s1682_s25   ;;  %s1367_s24 = sphi %s1424_s24, %s1681_s24  }
   0x4   : > { %s1449_s30 = sadd.s32 1, %s1379_s27   ;;  %s179_s8 = sadd.s32 1, %s1375_s26 }
   0x5   : > { %s176_s9 = ssub.s32 %s1379_s27, %s1449_s30  ;;  %p189_p0 = scmp.ne.s32.totalorder %s1375_s26, %s1371_s25 }
   0x6   : > { %p177_p1 = scmp.eq.s32.totalorder %s176_s9, 0  ;;  %p190_p2 = scmp.eq.s32.totalorder %s1445_s28, 1 }
   0x7   : > { %p195_p3 = scmp.ne.s32.totalorder %s1371_s25, %s1367_s24  ;;  %p196_p4 = scmp.eq.s32.totalorder %s1038_s29, 1 }
   0x8   : > { %s1460_s10 = scalar_select %p177_p1, %s1375_s26, %s179_s8  }
   0x9   : > { %p1462_p5 = por %p190_p2, %p189_p0  ;;  %p1466_p6 = por %p196_p4, %p195_p3 }
   0xa   : > { %p1041_p7 = scmp.ge.s32.totalorder %s1379_s27, 1  ;;  %p241_p8 = scmp.lt.s32.totalorder %s1379_s27, 3 }
   0xc   : > { %p242_p9 = pnand %p1041_p7, %p241_p8 }
   0xd   : > { %s1043_s17 = sshll.u32 (!%p242_p9), %s1445_s28, 4  ;;  %s270_s13 = sand.u32 (!%p242_p9), 1, %s1371_s25  }
   0xe   : > { %245 = sbr.rel (%p242_p9) target bundleno = 667 (0x29b), region = 48  ;;  %p274_p10 = scmp.lt.s32.totalorder (!%p242_p9), %s1043_s17, 31 }
   0xf   : > { %s1042_s14 = sshll.u32 (!%p242_p9), %s270_s13, 7  ;;  %s1381_s23 = smov (!%p242_p9), [#allocation2]  }
  0x10   : > { %s1602_s16 = scalar_lea.vmem (!%p242_p9), [#allocation2], %s1042_s14  ;;  %s1323_s29 = sshll.u32 (!%p242_p9), %s1381_s23, 4  ;;  %s1324_s29 = int_to_ptr.vmem [resolvable:$false] %s1323_s29 }
  0x11   : > { %s976_s18 = sshll.u32 (!%p242_p9), %s1602_s16, 4  ;;  %s1325_s9 = scalar_lea.vmem (!%p242_p9), %s1324_s29, 4096  ;;  %s1625_s18 = int_to_ptr.vmem [resolvable:$true] %s976_s18 }
  0x12   : > { %p1326_p0 = scmp.lt.s32.totalorder (!%p242_p9), %s1625_s18, %s1324_s29 }
  0x13   : > { %v299_v0 = vld [vmem:[%s1672_s1 + $0x18] sm:$0xff]  ;;  %v298_v1 = vld [vmem:[%s1672_s1 + $0x10] sm:$0xff]  ;;  %v297_v2 = vld [vmem:[%s1672_s1 + $0x8] sm:$0xff]  ;;  %s1686_s17 = smov (!%p274_p10, %s1043_s17), 31  ;;  %vm307_vm0 = vcmask 261120   ;;  %vm532_vm1 = vcmask 523264  }
  0x14   : > { %1166 = vmatprep.subr.mxu0 %v299_v0  ;;  %1270 = vmatprep.subr.mxu1 %v299_v0  ;;  %v296_v3 = vld [vmem:[%s1672_s1] sm:$0xff]  ;;  %s1044_s22 = sshll.u32 %s1686_s17, 3  ;;  %v524_v7 = vld [vmem:[%s1674_s3 + $0x38] sm:$0xff]  ;;  %v523_v9 = vld [vmem:[%s1674_s3 + $0x30] sm:$0xff]  ;;  %s1101_s17 = sshll.u32 %s1445_s28, 11 }
  0x15   : > { %1167 = vmatpush3.msra.mxu0 %v299_v0  ;;  %1274 = vmatpush3.msra.mxu1 %v299_v0  ;;  %s1488_s8 = scalar_lea.vmem %s1671_s0, %s1044_s22  ;;  %v522_v15 = vld [vmem:[%s1674_s3 + $0x28] sm:$0xff]  ;;  %v521_v18 = vld [vmem:[%s1674_s3 + $0x20] sm:$0xff]  ;;  %v520_v21 = vld [vmem:[%s1674_s3 + $0x18] sm:$0xff]  ;;  %s1623_s21 = scalar_lea.hbm %s1678_s7, %s1101_s17 }
  0x16   : > { %1168 = vmatprep.subr.mxu0 %v298_v1  ;;  %1271 = vmatprep.subr.mxu1 %v298_v1  ;;  %v280_v4 = vld [vmem:[%s1488_s8] sm:$0xff]  ;;  %v281_v5 = vld [vmem:[%s1488_s8 + $0x8] sm:$0xff]  ;;  %v282_v6 = vld [vmem:[%s1488_s8 + $0x10] sm:$0xff]  ;;  %s1631_s28 = scalar_lea.sflag [#allocation3], %s270_s13  ;;  %s1319_s22 = scalar_lea.vmem %s1625_s18, 2048 }
  0x17   : > { %1169 = vmatpush3.msra.mxu0 %v298_v1  ;;  %1275 = vmatpush3.msra.mxu1 %v298_v1  ;;  %v288_v8 = vld [vmem:[%s1488_s8 + $0x40] sm:$0xff]  ;;  %v283_v10 = vld [vmem:[%s1488_s8 + $0x18] sm:$0xff]  ;;  %v289_v11 = vld [vmem:[%s1488_s8 + $0x48] sm:$0xff]  ;;  %p1320_p11 = scmp.ne.s32.totalorder %s1625_s18, %s1319_s22  ;;  %p1327_p1 = scmp.lt.s32.totalorder %s1325_s9, %s1319_s22 }
  0x18   : > { %1170 = vmatprep.subr.mxu0 %v297_v2  ;;  %1272 = vmatprep.subr.mxu1 %v297_v2  ;;  %v290_v12 = vld [vmem:[%s1488_s8 + $0x50] sm:$0xff]  ;;  %v284_v13 = vld [vmem:[%s1488_s8 + $0x20] sm:$0xff]  ;;  %v291_v14 = vld [vmem:[%s1488_s8 + $0x58] sm:$0xff] }
  0x19   : > { %1171 = vmatpush3.msra.mxu0 %v297_v2  ;;  %1276 = vmatpush3.msra.mxu1 %v297_v2  ;;  %v292_v16 = vld [vmem:[%s1488_s8 + $0x60] sm:$0xff]  ;;  %v285_v17 = vld [vmem:[%s1488_s8 + $0x28] sm:$0xff]  ;;  %v286_v19 = vld [vmem:[%s1488_s8 + $0x30] sm:$0xff]  ;;  %p1321_p12 = pnand %p1320_p11, %p1462_p5  ;;  %p1328_p2 = por %p1327_p1, %p1326_p0 }
  0x1a   : > { %1172 = vmatprep.subr.mxu0 %v296_v3  ;;  %1273 = vmatprep.subr.mxu1 %v296_v3  ;;  %v293_v20 = vld [vmem:[%s1488_s8 + $0x68] sm:$0xff]  ;;  %v294_v22 = vld [vmem:[%s1488_s8 + $0x70] sm:$0xff]  ;;  %v287_v23 = vld [vmem:[%s1488_s8 + $0x38] sm:$0xff] }
  0x1b   : > { %1173 = vmatpush3.msra.mxu0 %v296_v3  ;;  %1174 = vmatprep.mubr.msk.f32.mxu0 %vm307_vm0, %v280_v4  ;;  %v295_v24 = vld [vmem:[%s1488_s8 + $0x78] sm:$0xff]  ;;  %v519_v25 = vld [vmem:[%s1674_s3 + $0x10] sm:$0xff]  ;;  %v518_v26 = vld [vmem:[%s1674_s3 + $0x8] sm:$0xff]  ;;  %p1322_p13 = pneg %p1321_p12 }
  0x1c   : > { %1175 = vmatmul.mubr.msk.f32.vlgmr.msra.gmra.mxu0 %vm307_vm0, %v281_v5  ;;  %1277 = vmatpush3.msra.mxu1 %v296_v3  ;;  %v517_v27 = vld [vmem:[%s1674_s3] sm:$0xff]  ;;  %v745_v28 = vld [vmem:[%s1676_s5 + $0x18] sm:$0xff]  ;;  %v744_v29 = vld [vmem:[%s1676_s5 + $0x10] sm:$0xff] }
  0x1d   : > { %1177 = vmatprep.mubr.msk.f32.mxu0 %vm307_vm0, %v282_v6  ;;  %1186 = vmatprep.mubr.msk.f32.mxu1 %vm307_vm0, %v288_v8  ;;  %v743_v30 = vld [vmem:[%s1676_s5 + $0x8] sm:$0xff]  ;;  %v1045_v31 = vld [vmem:[%s1673_s2] ss:$0 sm:$0xff]  ;;  %p1329_p3 = pnand %p1328_p2, %p1322_p13 }
  0x1e   : > { %1187 = vmatmul.mubr.msk.f32.vlgmr.msra.gmra.mxu1 %vm307_vm0, %v289_v11  ;;  %1198 = vmatprep.subr.mxu1 %v524_v7 }
  0x1f   : > { %1189 = vmatprep.mubr.msk.f32.mxu1 %vm307_vm0, %v290_v12  ;;  %1199 = vmatpush3.msra.mxu1 %v524_v7 }
  0x20   : > { %1178 = vmatmul.mubr.msk.f32.gmra.mxu0 %vm307_vm0, %v283_v10  ;;  %1200 = vmatprep.subr.mxu1 %v523_v9 }
  0x21   : > { %1180 = vmatprep.mubr.msk.f32.mxu0 %vm307_vm0, %v284_v13  ;;  %1201 = vmatpush3.msra.mxu1 %v523_v9 }
  0x22   : > { %1190 = vmatmul.mubr.msk.f32.gmra.mxu1 %vm307_vm0, %v291_v14  ;;  %1202 = vmatprep.subr.mxu1 %v522_v15 }
  0x23   : > { %1192 = vmatprep.mubr.msk.f32.mxu1 %vm307_vm0, %v292_v16  ;;  %1203 = vmatpush3.msra.mxu1 %v522_v15  ;;  %v742_v16 = vld [vmem:[%s1676_s5] sm:$0xff] }
  0x24   : > { %1181 = vmatmul.mubr.msk.f32.gmra.mxu0 %vm307_vm0, %v285_v17  ;;  %1204 = vmatprep.subr.mxu1 %v521_v18  ;;  %v1062_v17 = vld [vmem:[%s1675_s4] ss:$0 sm:$0xff] }
  0x25   : > { %1183 = vmatprep.mubr.msk.f32.mxu0 %vm307_vm0, %v286_v19  ;;  %1205 = vmatpush3.msra.mxu1 %v521_v18 }
  0x26   : > { %1193 = vmatmul.mubr.msk.f32.gmra.mxu1 %vm307_vm0, %v293_v20  ;;  %1206 = vmatprep.subr.mxu1 %v520_v21 }
  0x27   : > { %1195 = vmatprep.mubr.msk.f32.mxu1 %vm307_vm0, %v294_v22  ;;  %1207 = vmatpush3.msra.mxu1 %v520_v21 }
  0x28   : > { %1184 = vmatmul.mubr.msk.f32.gmra.mxu0 %vm307_vm0, %v287_v23  ;;  %1208 = vmatprep.subr.mxu1 %v519_v25 }
  0x29   : > { %1209 = vmatpush3.msra.mxu1 %v519_v25  ;;  %1238 = vmatprep.subr.mxu0 %v745_v28 }
  0x2a   : > { %1196 = vmatmul.mubr.msk.f32.gmra.mxu1 %vm307_vm0, %v295_v24  ;;  %1210 = vmatprep.subr.mxu1 %v518_v26 }
  0x2b   : > { %1211 = vmatpush3.msra.mxu1 %v518_v26  ;;  %1239 = vmatpush3.msra.mxu0 %v745_v28 }
  0x2c   : > { %1212 = vmatprep.subr.mxu1 %v517_v27  ;;  %1240 = vmatprep.subr.mxu0 %v744_v29 }
  0x2d   : > { %1213 = vmatpush3.msra.mxu1 %v517_v27  ;;  %1241 = vmatpush3.msra.mxu0 %v744_v29 }
  0x2e   : > { %1242 = vmatprep.subr.mxu0 %v743_v30 }
  0x2f   : > { %1243 = vmatpush3.msra.mxu0 %v743_v30 }
  0x30   : > { %1244 = vmatprep.subr.mxu0 %v742_v16 }
  0x31   : > { %1245 = vmatpush3.msra.mxu0 %v742_v16 }
  0xdc   : > { %v1176_v32 = vpop.f32.mrf.mxu0 }
  0xdd   : > { %v428_v33 = vadd.f32 %v1176_v32, %v1045_v31 }
  0xde   : > { %v422_v34 = vpop.f32.mrf.mxu0  ;;  %v1188_v35 = vpop.f32.mrf.mxu1 }
  0xdf   : > { %v423_v36 = vadd.f32 %v1045_v31, %v422_v34  ;;  %v502_v40 = vmax.f32 %v428_v33, 0.0  ;;  %v468_v1 = vadd.f32 %v1188_v35, %v1045_v31 }
  0xe0   : > { %v1179_v37 = vpop.f32.mrf.mxu0  ;;  %v462_v38 = vpop.f32.mrf.mxu1 }
  0xe1   : > { %v501_v39 = vmax.f32 %v423_v36, 0.0  ;;  %v438_v41 = vadd.f32 %v1179_v37, %v1045_v31  ;;  %v463_v55 = vadd.f32 %v1045_v31, %v462_v38  ;;  %v510_v5 = vmax.f32 %v468_v1, 0.0 }
  0xe2   : > { %v432_v42 = vpop.f32.mrf.mxu0  ;;  %v1191_v43 = vpop.f32.mrf.mxu1 }
  0xe3   : > { %v433_v44 = vadd.f32 %v1045_v31, %v432_v42  ;;  %1214 = vmatprep.mubr.msk.f32.mxu1 %vm532_vm1, %v501_v39  ;;  %v504_v48 = vmax.f32 %v438_v41, 0.0  ;;  %v509_v62 = vmax.f32 %v463_v55, 0.0  ;;  %v478_v6 = vadd.f32 %v1191_v43, %v1045_v31 }
  0xe4   : > { %v1182_v45 = vpop.f32.mrf.mxu0  ;;  %1215 = vmatmul.mubr.msk.f32.vlgmr.msra.gmra.mxu1 %vm532_vm1, %v502_v40  ;;  %v472_v46 = vpop.f32.mrf.mxu1 }
  0xe5   : > { %v503_v47 = vmax.f32 %v433_v44, 0.0  ;;  %v448_v49 = vadd.f32 %v1182_v45, %v1045_v31  ;;  %v473_v63 = vadd.f32 %v1045_v31, %v472_v46  ;;  %v512_v10 = vmax.f32 %v478_v6, 0.0 }
  0xe6   : > { %v442_v50 = vpop.f32.mrf.mxu0  ;;  %v1194_v51 = vpop.f32.mrf.mxu1 }
  0xe7   : > { %v443_v52 = vadd.f32 %v1045_v31, %v442_v50  ;;  %1217 = vmatprep.mubr.msk.f32.mxu1 %vm532_vm1, %v503_v47  ;;  %v506_v56 = vmax.f32 %v448_v49, 0.0  ;;  %v511_v3 = vmax.f32 %v473_v63, 0.0  ;;  %v488_v11 = vadd.f32 %v1194_v51, %v1045_v31 }
  0xe8   : > { %v1185_v53 = vpop.f32.mrf.mxu0  ;;  %1218 = vmatmul.mubr.msk.f32.gmra.mxu1 %vm532_vm1, %v504_v48  ;;  %v482_v59 = vpop.f32.mrf.mxu1 }
  0xe9   : > { %v505_v54 = vmax.f32 %v443_v52, 0.0  ;;  %v458_v57 = vadd.f32 %v1185_v53, %v1045_v31  ;;  %v483_v4 = vadd.f32 %v1045_v31, %v482_v59  ;;  %v514_v13 = vmax.f32 %v488_v11, 0.0 }
  0xea   : > { %v452_v58 = vpop.f32.mrf.mxu0  ;;  %v1197_v2 = vpop.f32.mrf.mxu1 }
  0xeb   : > { %v453_v60 = vadd.f32 %v1045_v31, %v452_v58  ;;  %1220 = vmatprep.mubr.msk.f32.mxu1 %vm532_vm1, %v505_v54  ;;  %v508_v0 = vmax.f32 %v458_v57, 0.0  ;;  %v513_v8 = vmax.f32 %v483_v4, 0.0  ;;  %v498_v14 = vadd.f32 %v1197_v2, %v1045_v31  ;;  %v1079_v2 = vld [vmem:[%s1677_s6] ss:$0 sm:$0xff] }
  0xec   : > { %1221 = vmatmul.mubr.msk.f32.gmra.mxu1 %vm532_vm1, %v506_v56  ;;  %v492_v7 = vpop.f32.mrf.mxu1 }
  0xed   : > { %v507_v61 = vmax.f32 %v453_v60, 0.0  ;;  %v493_v9 = vadd.f32 %v1045_v31, %v492_v7  ;;  %v516_v15 = vmax.f32 %v498_v14, 0.0 }
  0xef   : > { %1223 = vmatprep.mubr.msk.f32.mxu1 %vm532_vm1, %v507_v61  ;;  %v515_v12 = vmax.f32 %v493_v9, 0.0 }
  0xf0   : > { %1224 = vmatmul.mubr.msk.f32.gmra.mxu1 %vm532_vm1, %v508_v0 }
  0xf1   : > { %1226 = vmatprep.mubr.msk.f32.mxu1 %vm532_vm1, %v509_v62 }
  0xf4   : > { %1227 = vmatmul.mubr.msk.f32.gmra.mxu1 %vm532_vm1, %v510_v5 }
  0xf5   : > { %1229 = vmatprep.mubr.msk.f32.mxu1 %vm532_vm1, %v511_v3 }
  0xf8   : > { %1230 = vmatmul.mubr.msk.f32.gmra.mxu1 %vm532_vm1, %v512_v10 }
  0xf9   : > { %1232 = vmatprep.mubr.msk.f32.mxu1 %vm532_vm1, %v513_v8 }
  0xfc   : > { %1233 = vmatmul.mubr.msk.f32.gmra.mxu1 %vm532_vm1, %v514_v13 }
  0xfd   : > { %1235 = vmatprep.mubr.msk.f32.mxu1 %vm532_vm1, %v515_v12 }
 0x100   : > { %1236 = vmatmul.mubr.msk.f32.gmra.mxu1 %vm532_vm1, %v516_v15 }
 0x1a4   : > { %v1216_v18 = vpop.f32.mrf.mxu1 }
 0x1a5   : > { %v653_v19 = vadd.f32 %v1216_v18, %v1062_v17 }
 0x1a6   : > { %v647_v20 = vpop.f32.mrf.mxu1 }
 0x1a7   : > { %v648_v21 = vadd.f32 %v1062_v17, %v647_v20  ;;  %v727_v24 = vmax.f32 %v653_v19, 0.0 }
 0x1a8   : > { %v1219_v22 = vpop.f32.mrf.mxu1 }
 0x1a9   : > { %v726_v23 = vmax.f32 %v648_v21, 0.0  ;;  %v663_v25 = vadd.f32 %v1219_v22, %v1062_v17 }
 0x1aa   : > { %v657_v26 = vpop.f32.mrf.mxu1 }
 0x1ab   : > { %v658_v27 = vadd.f32 %v1062_v17, %v657_v26  ;;  %1246 = vmatprep.mubr.msk.f32.mxu0 %vm307_vm0, %v726_v23  ;;  %v729_v30 = vmax.f32 %v663_v25, 0.0 }
 0x1ac   : > { %v1222_v28 = vpop.f32.mrf.mxu1  ;;  %1247 = vmatmul.mubr.msk.f32.vlgmr.msra.gmra.mxu0 %vm307_vm0, %v727_v24 }
 0x1ad   : > { %v728_v29 = vmax.f32 %v658_v27, 0.0  ;;  %v673_v31 = vadd.f32 %v1222_v28, %v1062_v17 }
 0x1ae   : > { %v667_v32 = vpop.f32.mrf.mxu1 }
 0x1af   : > { %v668_v33 = vadd.f32 %v1062_v17, %v667_v32  ;;  %1249 = vmatprep.mubr.msk.f32.mxu0 %vm307_vm0, %v728_v29  ;;  %v731_v36 = vmax.f32 %v673_v31, 0.0 }
 0x1b0   : > { %v1225_v34 = vpop.f32.mrf.mxu1  ;;  %1250 = vmatmul.mubr.msk.f32.gmra.mxu0 %vm307_vm0, %v729_v30 }
 0x1b1   : > { %v730_v35 = vmax.f32 %v668_v33, 0.0  ;;  %v683_v37 = vadd.f32 %v1225_v34, %v1062_v17 }
 0x1b2   : > { %v677_v38 = vpop.f32.mrf.mxu1 }
 0x1b3   : > { %v678_v39 = vadd.f32 %v1062_v17, %v677_v38  ;;  %1252 = vmatprep.mubr.msk.f32.mxu0 %vm307_vm0, %v730_v35  ;;  %v733_v42 = vmax.f32 %v683_v37, 0.0 }
 0x1b4   : > { %v1228_v40 = vpop.f32.mrf.mxu1  ;;  %1253 = vmatmul.mubr.msk.f32.gmra.mxu0 %vm307_vm0, %v731_v36 }
 0x1b5   : > { %v732_v41 = vmax.f32 %v678_v39, 0.0  ;;  %v693_v43 = vadd.f32 %v1228_v40, %v1062_v17 }
 0x1b6   : > { %v687_v44 = vpop.f32.mrf.mxu1 }
 0x1b7   : > { %v688_v45 = vadd.f32 %v1062_v17, %v687_v44  ;;  %1255 = vmatprep.mubr.msk.f32.mxu0 %vm307_vm0, %v732_v41  ;;  %v735_v48 = vmax.f32 %v693_v43, 0.0 }
 0x1b8   : > { %v1231_v46 = vpop.f32.mrf.mxu1  ;;  %1256 = vmatmul.mubr.msk.f32.gmra.mxu0 %vm307_vm0, %v733_v42 }
 0x1b9   : > { %v734_v47 = vmax.f32 %v688_v45, 0.0  ;;  %v703_v49 = vadd.f32 %v1231_v46, %v1062_v17 }
 0x1ba   : > { %v697_v50 = vpop.f32.mrf.mxu1 }
 0x1bb   : > { %v698_v51 = vadd.f32 %v1062_v17, %v697_v50  ;;  %1258 = vmatprep.mubr.msk.f32.mxu0 %vm307_vm0, %v734_v47  ;;  %v737_v54 = vmax.f32 %v703_v49, 0.0 }
 0x1bc   : > { %v1234_v52 = vpop.f32.mrf.mxu1  ;;  %1259 = vmatmul.mubr.msk.f32.gmra.mxu0 %vm307_vm0, %v735_v48 }
 0x1bd   : > { %v736_v53 = vmax.f32 %v698_v51, 0.0  ;;  %v713_v55 = vadd.f32 %v1234_v52, %v1062_v17 }
 0x1be   : > { %v707_v56 = vpop.f32.mrf.mxu1 }
 0x1bf   : > { %v708_v57 = vadd.f32 %v1062_v17, %v707_v56  ;;  %1261 = vmatprep.mubr.msk.f32.mxu0 %vm307_vm0, %v736_v53  ;;  %v739_v60 = vmax.f32 %v713_v55, 0.0 }
 0x1c0   : > { %v1237_v58 = vpop.f32.mrf.mxu1  ;;  %1262 = vmatmul.mubr.msk.f32.gmra.mxu0 %vm307_vm0, %v737_v54 }
 0x1c1   : > { %v738_v59 = vmax.f32 %v708_v57, 0.0  ;;  %v723_v61 = vadd.f32 %v1237_v58, %v1062_v17 }
 0x1c2   : > { %v717_v62 = vpop.f32.mrf.mxu1 }
 0x1c3   : > { %v718_v63 = vadd.f32 %v1062_v17, %v717_v62  ;;  %1264 = vmatprep.mubr.msk.f32.mxu0 %vm307_vm0, %v738_v59  ;;  %v741_v1 = vmax.f32 %v723_v61, 0.0 }
 0x1c4   : > { %1265 = vmatmul.mubr.msk.f32.gmra.mxu0 %vm307_vm0, %v739_v60 }
 0x1c5   : > { %v740_v0 = vmax.f32 %v718_v63, 0.0 }
 0x1c7   : > { %1267 = vmatprep.mubr.msk.f32.mxu0 %vm307_vm0, %v740_v0 }
 0x1c8   : > { %1268 = vmatmul.mubr.msk.f32.gmra.mxu0 %vm307_vm0, %v741_v1 }
 0x26c   : > { %v1248_v3 = vpop.f32.mrf.mxu0 }
 0x26d   : > { %v873_v4 = vadd.f32 %v1248_v3, %v1079_v2 }
 0x26e   : > { %v867_v5 = vpop.f32.mrf.mxu0 }
 0x26f   : > { %947 = vst [vmem:[%s1602_s16 + $0x8] sm:$0xff] %v873_v4  ;;  %v868_v6 = vadd.f32 %v1079_v2, %v867_v5 }
 0x270   : > { %v1251_v7 = vpop.f32.mrf.mxu0 }
 0x271   : > { %946 = vst [vmem:[%s1602_s16] sm:$0xff] %v868_v6  ;;  %v883_v8 = vadd.f32 %v1251_v7, %v1079_v2 }
 0x272   : > { %v877_v9 = vpop.f32.mrf.mxu0 }
 0x273   : > { %949 = vst [vmem:[%s1602_s16 + $0x18] sm:$0xff] %v883_v8  ;;  %v878_v10 = vadd.f32 %v1079_v2, %v877_v9 }
 0x274   : > { %v1254_v11 = vpop.f32.mrf.mxu0 }
 0x275   : > { %948 = vst [vmem:[%s1602_s16 + $0x10] sm:$0xff] %v878_v10  ;;  %v893_v12 = vadd.f32 %v1254_v11, %v1079_v2 }
 0x276   : > { %v887_v13 = vpop.f32.mrf.mxu0 }
 0x277   : > { %951 = vst [vmem:[%s1602_s16 + $0x28] sm:$0xff] %v893_v12  ;;  %v888_v14 = vadd.f32 %v1079_v2, %v887_v13 }
 0x278   : > { %v1257_v15 = vpop.f32.mrf.mxu0 }
 0x279   : > { %950 = vst [vmem:[%s1602_s16 + $0x20] sm:$0xff] %v888_v14  ;;  %v903_v16 = vadd.f32 %v1257_v15, %v1079_v2 }
 0x27a   : > { %v897_v17 = vpop.f32.mrf.mxu0 }
 0x27b   : > { %953 = vst [vmem:[%s1602_s16 + $0x38] sm:$0xff] %v903_v16  ;;  %v898_v18 = vadd.f32 %v1079_v2, %v897_v17 }
 0x27c   : > { %v1260_v19 = vpop.f32.mrf.mxu0 }
 0x27d   : > { %952 = vst [vmem:[%s1602_s16 + $0x30] sm:$0xff] %v898_v18  ;;  %v913_v20 = vadd.f32 %v1260_v19, %v1079_v2 }
 0x27e   : > { %v907_v21 = vpop.f32.mrf.mxu0 }
 0x27f   : > { %955 = vst [vmem:[%s1602_s16 + $0x48] sm:$0xff] %v913_v20  ;;  %v908_v22 = vadd.f32 %v1079_v2, %v907_v21 }
 0x280   : > { %v1263_v23 = vpop.f32.mrf.mxu0 }
 0x281   : > { %954 = vst [vmem:[%s1602_s16 + $0x40] sm:$0xff] %v908_v22  ;;  %v923_v24 = vadd.f32 %v1263_v23, %v1079_v2 }
 0x282   : > { %v917_v25 = vpop.f32.mrf.mxu0 }
 0x283   : > { %957 = vst [vmem:[%s1602_s16 + $0x58] sm:$0xff] %v923_v24  ;;  %v918_v26 = vadd.f32 %v1079_v2, %v917_v25 }
 0x284   : > { %v1266_v27 = vpop.f32.mrf.mxu0 }
 0x285   : > { %956 = vst [vmem:[%s1602_s16 + $0x50] sm:$0xff] %v918_v26  ;;  %v933_v28 = vadd.f32 %v1266_v27, %v1079_v2 }
 0x286   : > { %v927_v29 = vpop.f32.mrf.mxu0 }
 0x287   : > { %959 = vst [vmem:[%s1602_s16 + $0x68] sm:$0xff] %v933_v28  ;;  %v928_v30 = vadd.f32 %v1079_v2, %v927_v29 }
 0x288   : > { %v1269_v31 = vpop.f32.mrf.mxu0 }
 0x289   : > { %958 = vst [vmem:[%s1602_s16 + $0x60] sm:$0xff] %v928_v30  ;;  %v943_v32 = vadd.f32 %v1269_v31, %v1079_v2 }
 0x28a   : > { %v937_v33 = vpop.f32.mrf.mxu0 }
 0x28b   : > { %961 = vst [vmem:[%s1602_s16 + $0x78] sm:$0xff] %v943_v32  ;;  %v938_v34 = vadd.f32 %v1079_v2, %v937_v33 }
 0x28d   : > { %960 = vst [vmem:[%s1602_s16 + $0x70] sm:$0xff] %v938_v34 }
 0x28e   : > { %1332 = shalt.err (!%p1329_p3)
}
 0x28f   : > { %s1333_s13 = scalar_lea.hbm %s1623_s21, 2048  ;;  %s1337_s15 = scalar_lea.hbm %s1678_s7, 4096 }
 0x290   : > { %p1334_p4 = scmp.ne.s32.totalorder %s1623_s21, %s1333_s13  ;;  %p1338_p9 = scmp.lt.s32.totalorder %s1623_s21, %s1678_s7 }
 0x291   : > { %p1339_p10 = scmp.lt.s32.totalorder %s1337_s15, %s1333_s13 }
 0x292   : > { %p1335_p7 = pnand %p1334_p4, %p1462_p5 }
 0x293   : > { %p1340_p11 = por %p1339_p10, %p1338_p9 }
 0x294   : > { %p1336_p8 = pneg %p1335_p7 }
 0x296   : > { %p1341_p12 = pnand %p1340_p11, %p1336_p8 }
 0x298   : > { %1344 = shalt.err (!%p1341_p12)
}
 0x299   : > { %s1382_s19 = smov 128   ;;  %s1383_s20 = smov 8  }
 0x29a   : > { %1278 = dma.vmem_to_hbm [thread:$0]  (%p1462_p5), %s1625_s18, 2048, %s1623_s21, %s1631_s28, %s1382_s19, %s1382_s19, %s1383_s20  }
 0x29b PF: > { %p1284_p13 = scmp.ge.s32.totalorder %s1379_s27, 2  ;;  %s991_s22 = sand.u32 1, %s1367_s24  }
 0x29c   : > { %s992_s23 = scalar_lea.sflag [#allocation3], %s991_s22 }
 0x29d   : > { %p1281_p0 = pnand %p1284_p13, %p1466_p6 }
 0x29f   : > { %p1282_p1 = pneg %p1281_p0 }
 0x2a1   : > { %1362 = dma.done.wait (%p1282_p1), %s992_s23, 2048  }
 0x2a2   : > { %1364 = vsyncadd (%p1282_p1), %s992_s23, 4294965248  ;;  %p17_p2 = scmp.ge.s32.totalorder %s1449_s30, 4   ;;  %s1681_s24 = smov %s1371_s25 }
 0x2a3   : > { %s1682_s25 = smov %s1375_s26  ;;  %s1683_s26 = smov %s1460_s10 }
 0x2a4   : > { %s1684_s27 = smov %s1449_s30  ;;  %19 = sbr.rel (!%p17_p2) target bundleno = 3 (0x3), region = 83 }
 0x2a9   :  { %997 = vsyncpa [#allocation3], 1 }
 0x2aa   :  { %999 = vsyncpa [#allocation3 + $0x1], 1 }

</bundles_post_ra>
